<compile_context>
chip_gen: v6e
topology: v6e:2x2x1
jax: 0.10.0
libtpu: 0.0.40
codegen_flags: <defaults>
</compile_context>

<pallas_src>
import functools

import jax
import jax.numpy as jnp
from jax import lax
from jax.experimental import pallas as pl
from jax.experimental.pallas import tpu as pltpu

LANE = 128


def _round_up(v, m):
    return ((v + m - 1) // m) * m


def _pad_last(a, target):
    """Zero-pad the last dim of `a` up to `target`."""
    pad = target - a.shape[-1]
    if pad == 0:
        return a
    cfg = [(0, 0)] * (a.ndim - 1) + [(0, pad)]
    return jnp.pad(a, cfg)


def gcn_kernel(adj_ref, x_ref, pool_ref,
               w1_ref, b1_ref, w2_ref, b2_ref, w3_ref, b3_ref,
               wfc_ref, bfc_ref, wsc_ref, bsc_ref,
               out_ref, *, num_classes):
    f32 = jnp.float32
    bf16 = jnp.bfloat16

    adj = adj_ref[...]        # [M, M]  bf16, block-diagonal Ahat over the batch
    x = x_ref[...]            # [M, F]  bf16, flattened node features

    # --- GCNConv 1 + ReLU, reordered as (adj @ x) @ W1 (F < H1) ---
    ax = jnp.dot(adj, x, preferred_element_type=f32)
    h = jnp.dot(ax.astype(bf16), w1_ref[...], preferred_element_type=f32) + b1_ref[...]
    h = jnp.maximum(h, 0.0)

    # --- GCNConv 2 + ReLU, reordered as adj @ (h @ W2) (H2 < H1) ---
    h = jnp.dot(h.astype(bf16), w2_ref[...], preferred_element_type=f32)
    h = jnp.dot(adj, h.astype(bf16), preferred_element_type=f32) + b2_ref[...]
    h = jnp.maximum(h, 0.0)

    # --- GCNConv 3 + ReLU ---
    h = jnp.dot(h.astype(bf16), w3_ref[...], preferred_element_type=f32)
    h = jnp.dot(adj, h.astype(bf16), preferred_element_type=f32) + b3_ref[...]
    h = jnp.maximum(h, 0.0)                                     # [M, H3] f32

    # --- degree-weighted mean pooling: pool[b, b*N + i] = deg[b, i] / N ---
    pooled = jnp.dot(pool_ref[...], h, preferred_element_type=f32)   # [B, H3] f32

    # --- fully_connected_first + ReLU ---
    s = jnp.dot(pooled.astype(bf16), wfc_ref[...], preferred_element_type=f32) + bfc_ref[...]
    s = jnp.maximum(s, 0.0)

    # --- scoring layer (class lane dim padded to 128) ---
    logits = jnp.dot(s.astype(bf16), wsc_ref[...], preferred_element_type=f32) + bsc_ref[...]

    # --- log_softmax over the real classes; padded lanes masked then zeroed ---
    col = lax.broadcasted_iota(jnp.int32, logits.shape, 1)
    valid = col < num_classes
    logits = jnp.where(valid, logits, -1e30)
    m = jnp.max(logits, axis=1, keepdims=True)
    z = logits - m
    lse = jnp.log(jnp.sum(jnp.exp(z), axis=1, keepdims=True))
    out_ref[...] = jnp.where(valid, z - lse, 0.0)


def gcn_forward(adj_norm, features, degrees, params, num_classes):
    """adj_norm: [B,N,N] f32 (Ahat = D^-1/2 (A+I) D^-1/2),
    features: [B,N,F] f32, degrees: [B,N,1] f32 (raw neighbor counts).
    Returns [B, num_classes] log-probabilities."""
    B, N, F = features.shape
    M = B * N
    FP = _round_up(F, 16)                 # bf16 sublane multiple (no-op at F=16)
    CP = _round_up(num_classes, LANE)     # lane-dense final store

    bf16 = jnp.bfloat16
    f32 = jnp.float32
    eye_b = jnp.eye(B, dtype=f32)

    # --- fuse the batch: block-diagonal adjacency + flattened features --------
    adj_bd = jnp.einsum('bc,bij->bicj', eye_b, adj_norm).reshape(M, M).astype(bf16)
    x = _pad_last(features, FP).reshape(M, FP).astype(bf16)

    # pooling matrix (f32, exact): pooled[b] = (1/N) * sum_i deg[b,i] * h[b*N+i]
    pool = jnp.einsum('bc,bj->bcj', eye_b, degrees[..., 0] / N).reshape(B, M).astype(f32)

    # weights: contraction dims at true sizes; only the class lane dim padded.
    w1 = params["w1"].astype(bf16)
    if FP != F:
        w1 = jnp.pad(w1, ((0, FP - F), (0, 0)))
    b1 = params["b1"].astype(f32)
    w2 = params["w2"].astype(bf16); b2 = params["b2"].astype(f32)
    w3 = params["w3"].astype(bf16); b3 = params["b3"].astype(f32)
    wfc = params["wfc"].astype(bf16); bfc = params["bfc"].astype(f32)
    wsc = _pad_last(params["wsc"], CP).astype(bf16)
    bsc = _pad_last(params["bsc"], CP).astype(f32)

    args = (adj_bd, x, pool, w1, b1, w2, b2, w3, b3, wfc, bfc, wsc, bsc)

    H1 = params["w1"].shape[1]
    H2 = params["w2"].shape[1]
    H3 = params["w3"].shape[1]
    BN = params["wfc"].shape[1]
    flops = (2 * M * M * FP + 2 * M * FP * H1            # conv1
             + 2 * M * H1 * H2 + 2 * M * M * H2          # conv2
             + 2 * M * H2 * H3 + 2 * M * M * H3          # conv3
             + 2 * B * M * H3                            # pooling
             + 2 * B * H3 * BN + 2 * B * BN * CP)        # head
    cost = pl.CostEstimate(
        flops=int(flops),
        transcendentals=int(B * CP),
        bytes_accessed=int(sum(a.size * a.dtype.itemsize for a in args) + B * CP * 4),
    )

    kernel = functools.partial(gcn_kernel, num_classes=num_classes)

    vmem = pl.BlockSpec(memory_space=pltpu.MemorySpace.VMEM)
    out = pl.pallas_call(
        kernel,
        out_shape=jax.ShapeDtypeStruct((B, CP), jnp.float32),
        in_specs=[vmem] * len(args),
        out_specs=vmem,
        cost_estimate=cost,
    )(*args)

    return out[:, :num_classes]            # [B, num_classes]


def make_params(key, feature_dim_size, num_classes):
    f1, f2, f3, bn = 64, 32, 32, 32
    ks = jax.random.split(key, 5)

    def glorot(k, fan_in, fan_out):
        lim = jnp.sqrt(6.0 / (fan_in + fan_out))
        return jax.random.uniform(k, (fan_in, fan_out), jnp.float32, -lim, lim)

    return {
        "w1": glorot(ks[0], feature_dim_size, f1), "b1": jnp.zeros((1, f1), jnp.float32),
        "w2": glorot(ks[1], f1, f2),               "b2": jnp.zeros((1, f2), jnp.float32),
        "w3": glorot(ks[2], f2, f3),               "b3": jnp.zeros((1, f3), jnp.float32),
        "wfc": glorot(ks[3], f3, bn),              "bfc": jnp.zeros((1, bn), jnp.float32),
        "wsc": glorot(ks[4], bn, num_classes),     "bsc": jnp.zeros((1, num_classes), jnp.float32),
    }


if __name__ == "__main__":
    key = jax.random.PRNGKey(0)
    B = 8                  # graphs per batch (fused into one kernel call)
    N = 16                 # nodes per graph
    feature_dim_size = 16  # node feature dimension
    num_classes = 4

    k_adj, k_feat, k_par = jax.random.split(key, 3)

    # Synthetic undirected graphs: symmetric 0/1 adjacency, no self loops.
    raw = jax.random.uniform(k_adj, (B, N, N))
    A = (raw + jnp.transpose(raw, (0, 2, 1)) > 1.0).astype(jnp.float32)
    eye = jnp.eye(N, dtype=jnp.float32)
    A = A * (1.0 - eye)

    # degrees = len(neighbors_i) per node (pre self-loop), used for pooling
    degrees = jnp.sum(A, axis=2, keepdims=True)                    # [B, N, 1]

    # GCN symmetric normalization (plain-JAX glue): Ahat = D^-1/2 (A+I) D^-1/2
    A_hat = A + eye
    d = jnp.sum(A_hat, axis=2)
    d_inv_sqrt = 1.0 / jnp.sqrt(d)
    adj_norm = A_hat * d_inv_sqrt[:, :, None] * d_inv_sqrt[:, None, :]

    features = jax.random.normal(k_feat, (B, N, feature_dim_size), jnp.float32)
    params = make_params(k_par, feature_dim_size, num_classes)

    out = gcn_forward(adj_norm, features, degrees, params, num_classes)
    jax.block_until_ready(out)
    assert out.shape == (B, num_classes)
    assert bool(jnp.all(jnp.isfinite(out)))
    print("KERNEL_OK")
</pallas_src>

<mosaic_0001>
module attributes {stable_mosaic.version = 11 : i64} {
  func.func @gcn_kernel(%arg0: memref<128x128xbf16, #tpu.memory_space<vmem>>, %arg1: memref<128x16xbf16, #tpu.memory_space<vmem>>, %arg2: memref<8x128xf32, #tpu.memory_space<vmem>>, %arg3: memref<16x64xbf16, #tpu.memory_space<vmem>>, %arg4: memref<1x64xf32, #tpu.memory_space<vmem>>, %arg5: memref<64x32xbf16, #tpu.memory_space<vmem>>, %arg6: memref<1x32xf32, #tpu.memory_space<vmem>>, %arg7: memref<32x32xbf16, #tpu.memory_space<vmem>>, %arg8: memref<1x32xf32, #tpu.memory_space<vmem>>, %arg9: memref<32x32xbf16, #tpu.memory_space<vmem>>, %arg10: memref<1x32xf32, #tpu.memory_space<vmem>>, %arg11: memref<32x128xbf16, #tpu.memory_space<vmem>>, %arg12: memref<1x128xf32, #tpu.memory_space<vmem>>, %arg13: memref<8x128xf32, #tpu.memory_space<vmem>>) attributes {dimension_semantics = [], scalar_prefetch = 0 : i64, scratch_operands = 0 : i64, tpu.core_type = #tpu.core_type<tc>} {
    %c0 = arith.constant 0 : index
    %c0_0 = arith.constant 0 : index
    %0 = vector.load %arg0[%c0, %c0_0] : memref<128x128xbf16, #tpu.memory_space<vmem>>, vector<128x128xbf16>
    %c0_1 = arith.constant 0 : index
    %c0_2 = arith.constant 0 : index
    %1 = vector.load %arg1[%c0_1, %c0_2] : memref<128x16xbf16, #tpu.memory_space<vmem>>, vector<128x16xbf16>
    %cst = arith.constant dense<0.000000e+00> : vector<128x16xf32>
    %2 = tpu.matmul %0, %1, %cst {dimension_numbers = #tpu.dot_dimension_numbers<[1], [0], [0], [1], [0, 0, 1, 1], [], []>} : vector<128x128xbf16>, vector<128x16xbf16>, vector<128x16xf32> -> vector<128x16xf32>
    %3 = arith.truncf %2 : vector<128x16xf32> to vector<128x16xbf16>
    %c0_3 = arith.constant 0 : index
    %c0_4 = arith.constant 0 : index
    %4 = vector.load %arg3[%c0_3, %c0_4] : memref<16x64xbf16, #tpu.memory_space<vmem>>, vector<16x64xbf16>
    %cst_5 = arith.constant dense<0.000000e+00> : vector<128x64xf32>
    %5 = tpu.matmul %3, %4, %cst_5 {dimension_numbers = #tpu.dot_dimension_numbers<[1], [0], [0], [1], [0, 0, 1, 1], [], []>} : vector<128x16xbf16>, vector<16x64xbf16>, vector<128x64xf32> -> vector<128x64xf32>
    %c0_6 = arith.constant 0 : index
    %c0_7 = arith.constant 0 : index
    %6 = vector.load %arg4[%c0_6, %c0_7] : memref<1x64xf32, #tpu.memory_space<vmem>>, vector<1x64xf32>
    %7 = vector.broadcast %6 : vector<1x64xf32> to vector<128x64xf32>
    %8 = arith.addf %5, %7 : vector<128x64xf32>
    %cst_8 = arith.constant 0.000000e+00 : f32
    %9 = vector.broadcast %cst_8 : f32 to vector<128x64xf32>
    %10 = arith.maximumf %8, %9 : vector<128x64xf32>
    %11 = arith.truncf %10 : vector<128x64xf32> to vector<128x64xbf16>
    %c0_9 = arith.constant 0 : index
    %c0_10 = arith.constant 0 : index
    %12 = vector.load %arg5[%c0_9, %c0_10] : memref<64x32xbf16, #tpu.memory_space<vmem>>, vector<64x32xbf16>
    %cst_11 = arith.constant dense<0.000000e+00> : vector<128x32xf32>
    %13 = tpu.matmul %11, %12, %cst_11 {dimension_numbers = #tpu.dot_dimension_numbers<[1], [0], [0], [1], [0, 0, 1, 1], [], []>} : vector<128x64xbf16>, vector<64x32xbf16>, vector<128x32xf32> -> vector<128x32xf32>
    %14 = arith.truncf %13 : vector<128x32xf32> to vector<128x32xbf16>
    %cst_12 = arith.constant dense<0.000000e+00> : vector<128x32xf32>
    %15 = tpu.matmul %0, %14, %cst_12 {dimension_numbers = #tpu.dot_dimension_numbers<[1], [0], [0], [1], [0, 0, 1, 1], [], []>} : vector<128x128xbf16>, vector<128x32xbf16>, vector<128x32xf32> -> vector<128x32xf32>
    %c0_13 = arith.constant 0 : index
    %c0_14 = arith.constant 0 : index
    %16 = vector.load %arg6[%c0_13, %c0_14] : memref<1x32xf32, #tpu.memory_space<vmem>>, vector<1x32xf32>
    %17 = vector.broadcast %16 : vector<1x32xf32> to vector<128x32xf32>
    %18 = arith.addf %15, %17 : vector<128x32xf32>
    %cst_15 = arith.constant 0.000000e+00 : f32
    %19 = vector.broadcast %cst_15 : f32 to vector<128x32xf32>
    %20 = arith.maximumf %18, %19 : vector<128x32xf32>
    %21 = arith.truncf %20 : vector<128x32xf32> to vector<128x32xbf16>
    %c0_16 = arith.constant 0 : index
    %c0_17 = arith.constant 0 : index
    %22 = vector.load %arg7[%c0_16, %c0_17] : memref<32x32xbf16, #tpu.memory_space<vmem>>, vector<32x32xbf16>
    %cst_18 = arith.constant dense<0.000000e+00> : vector<128x32xf32>
    %23 = tpu.matmul %21, %22, %cst_18 {dimension_numbers = #tpu.dot_dimension_numbers<[1], [0], [0], [1], [0, 0, 1, 1], [], []>} : vector<128x32xbf16>, vector<32x32xbf16>, vector<128x32xf32> -> vector<128x32xf32>
    %24 = arith.truncf %23 : vector<128x32xf32> to vector<128x32xbf16>
    %cst_19 = arith.constant dense<0.000000e+00> : vector<128x32xf32>
    %25 = tpu.matmul %0, %24, %cst_19 {dimension_numbers = #tpu.dot_dimension_numbers<[1], [0], [0], [1], [0, 0, 1, 1], [], []>} : vector<128x128xbf16>, vector<128x32xbf16>, vector<128x32xf32> -> vector<128x32xf32>
    %c0_20 = arith.constant 0 : index
    %c0_21 = arith.constant 0 : index
    %26 = vector.load %arg8[%c0_20, %c0_21] : memref<1x32xf32, #tpu.memory_space<vmem>>, vector<1x32xf32>
    %27 = vector.broadcast %26 : vector<1x32xf32> to vector<128x32xf32>
    %28 = arith.addf %25, %27 : vector<128x32xf32>
    %cst_22 = arith.constant 0.000000e+00 : f32
    %29 = vector.broadcast %cst_22 : f32 to vector<128x32xf32>
    %30 = arith.maximumf %28, %29 : vector<128x32xf32>
    %c0_23 = arith.constant 0 : index
    %c0_24 = arith.constant 0 : index
    %31 = vector.load %arg2[%c0_23, %c0_24] : memref<8x128xf32, #tpu.memory_space<vmem>>, vector<8x128xf32>
    %cst_25 = arith.constant dense<0.000000e+00> : vector<8x32xf32>
    %32 = tpu.matmul %31, %30, %cst_25 {dimension_numbers = #tpu.dot_dimension_numbers<[1], [0], [0], [1], [0, 0, 1, 1], [], []>} : vector<8x128xf32>, vector<128x32xf32>, vector<8x32xf32> -> vector<8x32xf32>
    %33 = arith.truncf %32 : vector<8x32xf32> to vector<8x32xbf16>
    %c0_26 = arith.constant 0 : index
    %c0_27 = arith.constant 0 : index
    %34 = vector.load %arg9[%c0_26, %c0_27] : memref<32x32xbf16, #tpu.memory_space<vmem>>, vector<32x32xbf16>
    %cst_28 = arith.constant dense<0.000000e+00> : vector<8x32xf32>
    %35 = tpu.matmul %33, %34, %cst_28 {dimension_numbers = #tpu.dot_dimension_numbers<[1], [0], [0], [1], [0, 0, 1, 1], [], []>} : vector<8x32xbf16>, vector<32x32xbf16>, vector<8x32xf32> -> vector<8x32xf32>
    %c0_29 = arith.constant 0 : index
    %c0_30 = arith.constant 0 : index
    %36 = vector.load %arg10[%c0_29, %c0_30] : memref<1x32xf32, #tpu.memory_space<vmem>>, vector<1x32xf32>
    %37 = vector.broadcast %36 : vector<1x32xf32> to vector<8x32xf32>
    %38 = arith.addf %35, %37 : vector<8x32xf32>
    %cst_31 = arith.constant 0.000000e+00 : f32
    %39 = vector.broadcast %cst_31 : f32 to vector<8x32xf32>
    %40 = arith.maximumf %38, %39 : vector<8x32xf32>
    %41 = arith.truncf %40 : vector<8x32xf32> to vector<8x32xbf16>
    %c0_32 = arith.constant 0 : index
    %c0_33 = arith.constant 0 : index
    %42 = vector.load %arg11[%c0_32, %c0_33] : memref<32x128xbf16, #tpu.memory_space<vmem>>, vector<32x128xbf16>
    %cst_34 = arith.constant dense<0.000000e+00> : vector<8x128xf32>
    %43 = tpu.matmul %41, %42, %cst_34 {dimension_numbers = #tpu.dot_dimension_numbers<[1], [0], [0], [1], [0, 0, 1, 1], [], []>} : vector<8x32xbf16>, vector<32x128xbf16>, vector<8x128xf32> -> vector<8x128xf32>
    %c0_35 = arith.constant 0 : index
    %c0_36 = arith.constant 0 : index
    %44 = vector.load %arg12[%c0_35, %c0_36] : memref<1x128xf32, #tpu.memory_space<vmem>>, vector<1x128xf32>
    %45 = vector.broadcast %44 : vector<1x128xf32> to vector<8x128xf32>
    %46 = arith.addf %43, %45 : vector<8x128xf32>
    %47 = tpu.iota {dimensions = array<i32: 1>} : vector<8x128xi32>
    %c4_i32 = arith.constant 4 : i32
    %48 = vector.broadcast %c4_i32 : i32 to vector<8x128xi32>
    %49 = arith.cmpi slt, %47, %48 : vector<8x128xi32>
    %cst_37 = arith.constant -1.000000e+30 : f32
    %50 = vector.broadcast %cst_37 : f32 to vector<8x128xf32>
    %51 = arith.select %49, %46, %50 : vector<8x128xi1>, vector<8x128xf32>
    %cst_38 = arith.constant dense<0xFF800000> : vector<8xf32>
    %52 = vector.multi_reduction <maximumf>, %51, %cst_38 [1] : vector<8x128xf32> to vector<8xf32>
    %53 = vector.shape_cast %52 : vector<8xf32> to vector<8x1xf32>
    %54 = vector.broadcast %53 : vector<8x1xf32> to vector<8x128xf32>
    %55 = arith.subf %51, %54 : vector<8x128xf32>
    %56 = math.exp %55 : vector<8x128xf32>
    %cst_39 = arith.constant dense<0.000000e+00> : vector<8xf32>
    %57 = vector.multi_reduction <add>, %56, %cst_39 [1] : vector<8x128xf32> to vector<8xf32>
    %58 = vector.shape_cast %57 : vector<8xf32> to vector<8x1xf32>
    %59 = math.log %58 : vector<8x1xf32>
    %60 = vector.broadcast %59 : vector<8x1xf32> to vector<8x128xf32>
    %61 = arith.subf %55, %60 : vector<8x128xf32>
    %cst_40 = arith.constant 0.000000e+00 : f32
    %62 = vector.broadcast %cst_40 : f32 to vector<8x128xf32>
    %63 = arith.select %49, %61, %62 : vector<8x128xi1>, vector<8x128xf32>
    %c0_41 = arith.constant 0 : index
    %c0_42 = arith.constant 0 : index
    %64 = vector.load %arg13[%c0_41, %c0_42] : memref<8x128xf32, #tpu.memory_space<vmem>>, vector<8x128xf32>
    tpu.vector_store %arg13[%c0_41, %c0_42], %63 {strides = array<i32>} : memref<8x128xf32, #tpu.memory_space<vmem>>, vector<8x128xf32>,
    return
  }
}

</mosaic_0001>

<bundles_post_ra>
// kernel: tpu_custom_call.1
= control target key start
LH: loop header
LB: loop body
LE: loop exit
PB: predicated region body
PF: predicated region fallthrough
CT: control target
= control target key end

     0   :  { %18 = vsyncpa [#allocation3], 0  ;;  %s2012_s0 = inlined_call_operand.vmem [shape: bf16[128,128], index: 0, kind: input, shape index: {}]   ;;  %s2013_s1 = inlined_call_operand.vmem [shape: bf16[128,16], index: 1, kind: input, shape index: {}]   ;;  %s2014_s2 = inlined_call_operand.hbm [shape: f32[8,128], index: 2, kind: input, shape index: {}]   ;;  %s2015_s3 = inlined_call_operand.hbm [shape: bf16[16,64], index: 3, kind: input, shape index: {}]   ;;  %s2016_s4 = inlined_call_operand.vmem [shape: f32[1,64], index: 4, kind: input, shape index: {}]   ;;  %s2017_s5 = inlined_call_operand.vmem [shape: bf16[64,32], index: 5, kind: input, shape index: {}]   ;;  %s2018_s6 = inlined_call_operand.vmem [shape: f32[1,32], index: 6, kind: input, shape index: {}]   ;;  %s2019_s7 = inlined_call_operand.vmem [shape: bf16[32,32], index: 7, kind: input, shape index: {}]   ;;  %s2020_s8 = inlined_call_operand.vmem [shape: f32[1,32], index: 8, kind: input, shape index: {}]   ;;  %s2021_s9 = inlined_call_operand.vmem [shape: bf16[32,32], index: 9, kind: input, shape index: {}]   ;;  %s2022_s10 = inlined_call_operand.vmem [shape: f32[1,32], index: 10, kind: input, shape index: {}]   ;;  %s2023_s11 = inlined_call_operand.vmem [shape: bf16[32,128], index: 11, kind: input, shape index: {}]   ;;  %s2024_s12 = inlined_call_operand.vmem [shape: f32[1,128], index: 12, kind: input, shape index: {}]   ;;  %s2025_s13 = inlined_call_operand.hbm [shape: f32[8,128], index: 13, kind: output, shape index: {}]  }
   0x1   :  { %19 = vsyncpa [#allocation6], 0 }
   0x2   :  { %20 = vsyncpa [#allocation4], 0  ;;  %s1733_s25 = smov [#allocation2]   ;;  %s1734_s27 = smov [#allocation5]  }
   0x3   :  { %s31_s26 = sshll.u32 %s1733_s25, 4  ;;  %s40_s28 = sshll.u32 %s1734_s27, 4  ;;  %s32_s26 = int_to_ptr.vmem [resolvable:$true] %s31_s26  ;;  %s41_s28 = int_to_ptr.vmem [resolvable:$true] %s40_s28 }
   0x4   :  { %s1675_s29 = scalar_lea.vmem %s32_s26, 128  ;;  %p1680_p1 = scmp.lt.s32.totalorder %s32_s26, %s32_s26 }
   0x5   :  { %p1676_p0 = scmp.ne.s32.totalorder %s32_s26, %s1675_s29  ;;  %p1681_p2 = scmp.lt.s32.totalorder %s1675_s29, %s1675_s29 }
   0x7   :  { %p1682_p3 = por %p1681_p2, %p1680_p1 }
   0x9   :  { %p1683_p4 = pnand %p1682_p3, %p1676_p0 }
   0xb   :  { %1686 = shalt.err (!%p1683_p4)
}
   0xc   :  { %34 = dma.hbm_to_vmem [thread:$0]  %s2014_s2, 128, %s32_s26, [#allocation3]  }
   0xd   :  { %s1695_s15 = scalar_lea.vmem %s41_s28, 128  ;;  %p1700_p6 = scmp.lt.s32.totalorder %s41_s28, %s41_s28 }
   0xe   :  { %p1696_p5 = scmp.ne.s32.totalorder %s41_s28, %s1695_s15  ;;  %p1701_p7 = scmp.lt.s32.totalorder %s1695_s15, %s1695_s15 }
  0x10   :  { %p1702_p8 = por %p1701_p7, %p1700_p6 }
  0x12   :  { %p1703_p9 = pnand %p1702_p8, %p1696_p5 }
  0x14   :  { %1706 = shalt.err (!%p1703_p9)
}
  0x15   :  { %s1735_s16 = smov 64   ;;  %s1736_s17 = smov 4  }
  0x16   :  { %46 = dma.hbm_to_vmem [thread:$0]  %s2015_s3, 128, %s41_s28, [#allocation6], %s1735_s16, %s1735_s16, %s1736_s17  }
  0x17   :  { %1727 = dma.done.wait [#allocation3], 128  }
  0x18   :  { %1728 = vsyncadd [#allocation3], 4294967168 }
  0x19   :  { %1729 = dma.done.wait [#allocation6], 128  }
  0x1a   :  { %1730 = vsyncadd [#allocation6], 4294967168  ;;  %v1636_v0 = vld [vmem:[%s2013_s1 + $0x38] sm:$0xff]   ;;  %v1637_v1 = vld [vmem:[%s2013_s1 + $0x30] sm:$0xff]   ;;  %vm320_vm0 = vcmask 130048   ;;  %vm498_vm1 = vcmask 523264  }
  0x1b   :  { %1420 = vmatprep.subr.bf16.mxu0 %v1636_v0  ;;  %v1638_v2 = vld [vmem:[%s2013_s1 + $0x28] sm:$0xff]   ;;  %v1639_v3 = vld [vmem:[%s2013_s1 + $0x20] sm:$0xff]   ;;  %v1640_v5 = vld [vmem:[%s2013_s1 + $0x18] sm:$0xff]   ;;  %vm772_vm2 = vcmask 261120   ;;  %vm1738_vm3 = vmmov 0  }
  0x1c   :  { %1421 = vmatpush3.bf16.msra.mxu0 %v1636_v0  ;;  %v1831_v4 = vld [vmem:[%s2012_s0] sm:$0xff]   ;;  %v1641_v6 = vld [vmem:[%s2013_s1 + $0x10] sm:$0xff]   ;;  %v1642_v7 = vld [vmem:[%s2013_s1 + $0x8] sm:$0xff]  }
  0x1d   :  { %1422 = vmatprep.subr.bf16.mxu0 %v1637_v1  ;;  %1436 = vmatprep.mubr.bf16.mxu0 %v1831_v4  ;;  %v1643_v8 = vld [vmem:[%s2013_s1] sm:$0xff]   ;;  %v1849_v9 = vld [vmem:[%s2012_s0 + $0x8] sm:$0xff]   ;;  %v1854_v10 = vld [vmem:[%s2012_s0 + $0x10] sm:$0xff]  }
  0x1e   :  { %v1861_v11 = vld [vmem:[%s2012_s0 + $0x18] sm:$0xff]   ;;  %v1866_v12 = vld [vmem:[%s2012_s0 + $0x20] sm:$0xff]   ;;  %v1873_v13 = vld [vmem:[%s2012_s0 + $0x28] sm:$0xff]  }
  0x1f   :  { %v1878_v14 = vld [vmem:[%s2012_s0 + $0x30] sm:$0xff]   ;;  %v1885_v15 = vld [vmem:[%s2012_s0 + $0x38] sm:$0xff]   ;;  %v1652_v16 = vld [vmem:[#allocation5] sm:$0xff]  }
  0x20   :  { %1423 = vmatpush3.bf16.msra.mxu0 %v1637_v1  ;;  %1452 = vmatprep.subr.bf16.mxu1 %v1652_v16  ;;  %v1653_v17 = vld [vmem:[%s2017_s5 + $0x18] sm:$0xff]   ;;  %v1654_v25 = vld [vmem:[%s2017_s5 + $0x10] sm:$0xff]   ;;  %v1655_v28 = vld [vmem:[%s2017_s5 + $0x8] sm:$0xff]  }
  0x21   :  { %1424 = vmatprep.subr.bf16.mxu0 %v1638_v2  ;;  %1453 = vmatpush3.bf16.msra.mxu1 %v1652_v16  ;;  %v1656_v44 = vld [vmem:[%s2017_s5] sm:$0xff]  }
  0x22   :  { %1470 = vmatprep.subr.bf16.mxu1 %v1653_v17  ;;  %v1276_v47 = vld [vmem:[%s2016_s4] ss:$0 sm:$0xff] }
  0x24   :  { %1425 = vmatpush3.bf16.msra.mxu0 %v1638_v2 }
  0x25   :  { %1426 = vmatprep.subr.bf16.mxu0 %v1639_v3 }
  0x28   :  { %1427 = vmatpush3.bf16.msra.mxu0 %v1639_v3 }
  0x29   :  { %1428 = vmatprep.subr.bf16.mxu0 %v1640_v5 }
  0x2c   :  { %1429 = vmatpush3.bf16.msra.mxu0 %v1640_v5 }
  0x2d   :  { %1430 = vmatprep.subr.bf16.mxu0 %v1641_v6 }
  0x30   :  { %1431 = vmatpush3.bf16.msra.mxu0 %v1641_v6 }
  0x31   :  { %1432 = vmatprep.subr.bf16.mxu0 %v1642_v7 }
  0x34   :  { %1433 = vmatpush3.bf16.msra.mxu0 %v1642_v7 }
  0x35   :  { %1434 = vmatprep.subr.bf16.mxu0 %v1643_v8 }
  0x38   :  { %1435 = vmatpush3.bf16.msra.mxu0 %v1643_v8 }
  0x3b   :  { %1437 = vmatmul.mubr.bf16.vlgmr.msra.gmra.mxu0 %v1849_v9 }
  0x3c   :  { %1440 = vmatprep.mubr.bf16.mxu0 %v1854_v10 }
  0x43   :  { %1441 = vmatmul.mubr.bf16.gmra.mxu0 %v1861_v11 }
  0x44   :  { %1444 = vmatprep.mubr.bf16.mxu0 %v1866_v12 }
  0x4b   :  { %1445 = vmatmul.mubr.bf16.gmra.mxu0 %v1873_v13 }
  0x4c   :  { %1448 = vmatprep.mubr.bf16.mxu0 %v1878_v14 }
  0x53   :  { %1449 = vmatmul.mubr.bf16.gmra.mxu0 %v1885_v15 }
  0x54   :  { %1510 = vmatprep.mubr.bf16.mxu0 %v1831_v4 }
  0xfb   :  { %v1438_v18 = vpop.f32.mrf.mxu0 }
  0xfd   :  { %v234_v19 = vpop.f32.mrf.mxu0 }
  0xff   :  { %v1439_v20 = vpop.f32.mrf.mxu0 }
 0x100   :  { %v298_v23 = vpack.c.bf16 %v1439_v20, %v1438_v18 }
 0x101   :  { %v237_v21 = vpop.f32.mrf.mxu0 }
 0x102   :  { %v297_v22 = vpack.c.bf16 %v237_v21, %v234_v19 }
 0x103   :  { %v1442_v24 = vpop.f32.mrf.mxu0 }
 0x104   :  { %1454 = vmatprep.mubr.msk.bf16.mxu1 %vm320_vm0, %v297_v22 }
 0x105   :  { %v250_v26 = vpop.f32.mrf.mxu0  ;;  %1455 = vmatmul.mubr.msk.bf16.vlgmr.msra.gmra.mxu1 %vm320_vm0, %v298_v23 }
 0x106   :  { %1471 = vmatpush3.bf16.msra.mxu1 %v1653_v17 }
 0x107   :  { %v1443_v27 = vpop.f32.mrf.mxu0  ;;  %1472 = vmatprep.subr.bf16.mxu1 %v1654_v25 }
 0x108   :  { %v300_v31 = vpack.c.bf16 %v1443_v27, %v1442_v24 }
 0x109   :  { %v253_v29 = vpop.f32.mrf.mxu0 }
 0x10a   :  { %v299_v30 = vpack.c.bf16 %v253_v29, %v250_v26  ;;  %1473 = vmatpush3.bf16.msra.mxu1 %v1654_v25 }
 0x10b   :  { %v1446_v32 = vpop.f32.mrf.mxu0  ;;  %1474 = vmatprep.subr.bf16.mxu1 %v1655_v28 }
 0x10c   :  { %1458 = vmatprep.mubr.msk.bf16.mxu1 %vm320_vm0, %v299_v30 }
 0x10d   :  { %v266_v33 = vpop.f32.mrf.mxu0  ;;  %1459 = vmatmul.mubr.msk.bf16.gmra.mxu1 %vm320_vm0, %v300_v31 }
 0x10e   :  { %1475 = vmatpush3.bf16.msra.mxu1 %v1655_v28 }
 0x10f   :  { %v1447_v34 = vpop.f32.mrf.mxu0  ;;  %1476 = vmatprep.subr.bf16.mxu1 %v1656_v44 }
 0x110   :  { %v302_v37 = vpack.c.bf16 %v1447_v34, %v1446_v32 }
 0x111   :  { %v269_v35 = vpop.f32.mrf.mxu0 }
 0x112   :  { %v301_v36 = vpack.c.bf16 %v269_v35, %v266_v33  ;;  %1477 = vmatpush3.bf16.msra.mxu1 %v1656_v44 }
 0x113   :  { %v1450_v38 = vpop.f32.mrf.mxu0 }
 0x114   :  { %1462 = vmatprep.mubr.msk.bf16.mxu1 %vm320_vm0, %v301_v36 }
 0x115   :  { %v282_v39 = vpop.f32.mrf.mxu0  ;;  %1463 = vmatmul.mubr.msk.bf16.gmra.mxu1 %vm320_vm0, %v302_v37 }
 0x117   :  { %v1451_v40 = vpop.f32.mrf.mxu0 }
 0x118   :  { %v304_v43 = vpack.c.bf16 %v1451_v40, %v1450_v38 }
 0x119   :  { %v285_v41 = vpop.f32.mrf.mxu0 }
 0x11a   :  { %v303_v42 = vpack.c.bf16 %v285_v41, %v282_v39 }
 0x11c   :  { %1466 = vmatprep.mubr.msk.bf16.mxu1 %vm320_vm0, %v303_v42 }
 0x11d   :  { %1467 = vmatmul.mubr.msk.bf16.gmra.mxu1 %vm320_vm0, %v304_v43 }
 0x1c5   :  { %v1456_v45 = vpop.f32.mrf.mxu1 }
 0x1c6   :  { %v388_v51 = vadd.f32 %v1456_v45, %v1276_v47 }
 0x1c7   :  { %v379_v46 = vpop.f32.mrf.mxu1 }
 0x1c8   :  { %v380_v49 = vadd.f32 %v1276_v47, %v379_v46  ;;  %v444_v58 = vmax.f32 %v388_v51, 0.0  ;;  %v1657_v46 = vld [vmem:[%s2019_s7 + $0x8] sm:$0xff]  }
 0x1c9   :  { %v1457_v48 = vpop.f32.mrf.mxu1  ;;  %1526 = vmatprep.subr.bf16.mxu1 %v1657_v46 }
 0x1ca   :  { %v391_v50 = vadd.f32 %v1457_v48, %v1276_v47  ;;  %v442_v56 = vmax.f32 %v380_v49, 0.0  ;;  %v1658_v48 = vld [vmem:[%s2019_s7] sm:$0xff]  }
 0x1cb   :  { %v382_v52 = vpop.f32.mrf.mxu1 }
 0x1cc   :  { %v383_v53 = vadd.f32 %v1276_v47, %v382_v52  ;;  %v445_v54 = vmax.f32 %v391_v50, 0.0 }
 0x1cd   :  { %v1460_v55 = vpop.f32.mrf.mxu1 }
 0x1ce   :  { %v443_v57 = vmax.f32 %v383_v53, 0.0  ;;  %v459_v61 = vpack.c.bf16 %v445_v54, %v444_v58  ;;  %v404_v1 = vadd.f32 %v1460_v55, %v1276_v47 }
 0x1cf   :  { %v395_v59 = vpop.f32.mrf.mxu1 }
 0x1d0   :  { %v458_v60 = vpack.c.bf16 %v443_v57, %v442_v56  ;;  %v396_v63 = vadd.f32 %v1276_v47, %v395_v59  ;;  %v448_v16 = vmax.f32 %v404_v1, 0.0 }
 0x1d1   :  { %v1461_v62 = vpop.f32.mrf.mxu1 }
 0x1d2   :  { %v407_v0 = vadd.f32 %v1461_v62, %v1276_v47  ;;  %1478 = vmatprep.mubr.msk.bf16.mxu1 %vm498_vm1, %v458_v60  ;;  %v446_v7 = vmax.f32 %v396_v63, 0.0 }
 0x1d3   :  { %v398_v2 = vpop.f32.mrf.mxu1  ;;  %1479 = vmatmul.mubr.msk.bf16.vlgmr.msra.gmra.mxu1 %vm498_vm1, %v459_v61 }
 0x1d4   :  { %v399_v3 = vadd.f32 %v1276_v47, %v398_v2  ;;  %v449_v5 = vmax.f32 %v407_v0, 0.0  ;;  %1527 = vmatpush3.bf16.msra.mxu1 %v1657_v46 }
 0x1d5   :  { %v1464_v6 = vpop.f32.mrf.mxu1  ;;  %1528 = vmatprep.subr.bf16.mxu1 %v1658_v48 }
 0x1d6   :  { %v447_v8 = vmax.f32 %v399_v3, 0.0  ;;  %v461_v19 = vpack.c.bf16 %v449_v5, %v448_v16  ;;  %v420_v23 = vadd.f32 %v1464_v6, %v1276_v47 }
 0x1d7   :  { %v411_v17 = vpop.f32.mrf.mxu1 }
 0x1d8   :  { %v460_v18 = vpack.c.bf16 %v447_v8, %v446_v7  ;;  %v412_v21 = vadd.f32 %v1276_v47, %v411_v17  ;;  %v452_v30 = vmax.f32 %v420_v23, 0.0  ;;  %1529 = vmatpush3.bf16.msra.mxu1 %v1658_v48 }
 0x1d9   :  { %v1465_v20 = vpop.f32.mrf.mxu1 }
 0x1da   :  { %v423_v22 = vadd.f32 %v1465_v20, %v1276_v47  ;;  %1482 = vmatprep.mubr.msk.bf16.mxu1 %vm498_vm1, %v460_v18  ;;  %v450_v28 = vmax.f32 %v412_v21, 0.0  ;;  %v1298_v18 = vld [vmem:[%s2018_s6] ss:$0 sm:$0xff] }
 0x1db   :  { %v414_v24 = vpop.f32.mrf.mxu1  ;;  %1483 = vmatmul.mubr.msk.bf16.gmra.mxu1 %vm498_vm1, %v461_v19 }
 0x1dc   :  { %v415_v25 = vadd.f32 %v1276_v47, %v414_v24  ;;  %v453_v26 = vmax.f32 %v423_v22, 0.0 }
 0x1dd   :  { %v1468_v27 = vpop.f32.mrf.mxu1 }
 0x1de   :  { %v451_v29 = vmax.f32 %v415_v25, 0.0  ;;  %v463_v33 = vpack.c.bf16 %v453_v26, %v452_v30  ;;  %v436_v37 = vadd.f32 %v1468_v27, %v1276_v47 }
 0x1df   :  { %v427_v31 = vpop.f32.mrf.mxu1 }
 0x1e0   :  { %v462_v32 = vpack.c.bf16 %v451_v29, %v450_v28  ;;  %v428_v35 = vadd.f32 %v1276_v47, %v427_v31  ;;  %v456_v43 = vmax.f32 %v436_v37, 0.0 }
 0x1e1   :  { %v1469_v34 = vpop.f32.mrf.mxu1 }
 0x1e2   :  { %v439_v36 = vadd.f32 %v1469_v34, %v1276_v47  ;;  %1486 = vmatprep.mubr.msk.bf16.mxu1 %vm498_vm1, %v462_v32  ;;  %v454_v41 = vmax.f32 %v428_v35, 0.0 }
 0x1e3   :  { %v430_v38 = vpop.f32.mrf.mxu1  ;;  %1487 = vmatmul.mubr.msk.bf16.gmra.mxu1 %vm498_vm1, %v463_v33 }
 0x1e4   :  { %v431_v39 = vadd.f32 %v1276_v47, %v430_v38  ;;  %v457_v40 = vmax.f32 %v439_v36, 0.0 }
 0x1e6   :  { %v455_v42 = vmax.f32 %v431_v39, 0.0  ;;  %v465_v45 = vpack.c.bf16 %v457_v40, %v456_v43 }
 0x1e8   :  { %v464_v44 = vpack.c.bf16 %v455_v42, %v454_v41 }
 0x1ea   :  { %1490 = vmatprep.mubr.msk.bf16.mxu1 %vm498_vm1, %v464_v44 }
 0x1eb   :  { %1491 = vmatmul.mubr.msk.bf16.gmra.mxu1 %vm498_vm1, %v465_v45 }
 0x293   :  { %v1480_v47 = vpop.f32.mrf.mxu1 }
 0x295   :  { %v557_v49 = vpop.f32.mrf.mxu1 }
 0x297   :  { %v1481_v50 = vpop.f32.mrf.mxu1 }
 0x298   :  { %v621_v7 = vpack.c.bf16 %v1481_v50, %v1480_v47 }
 0x299   :  { %v560_v51 = vpop.f32.mrf.mxu1 }
 0x29a   :  { %v620_v8 = vpack.c.bf16 %v560_v51, %v557_v49 }
 0x29b   :  { %v1484_v52 = vpop.f32.mrf.mxu1 }
 0x29d   :  { %v573_v53 = vpop.f32.mrf.mxu1 }
 0x29f   :  { %v1485_v54 = vpop.f32.mrf.mxu1 }
 0x2a0   :  { %v623_v5 = vpack.c.bf16 %v1485_v54, %v1484_v52 }
 0x2a1   :  { %v576_v55 = vpop.f32.mrf.mxu1 }
 0x2a2   :  { %v622_v6 = vpack.c.bf16 %v576_v55, %v573_v53 }
 0x2a3   :  { %v1488_v56 = vpop.f32.mrf.mxu1 }
 0x2a5   :  { %v589_v57 = vpop.f32.mrf.mxu1 }
 0x2a7   :  { %v1489_v58 = vpop.f32.mrf.mxu1 }
 0x2a8   :  { %v625_v2 = vpack.c.bf16 %v1489_v58, %v1488_v56 }
 0x2a9   :  { %v592_v59 = vpop.f32.mrf.mxu1 }
 0x2aa   :  { %v624_v3 = vpack.c.bf16 %v592_v59, %v589_v57 }
 0x2ab   :  { %v1492_v60 = vpop.f32.mrf.mxu1 }
 0x2ad   :  { %v605_v61 = vpop.f32.mrf.mxu1 }
 0x2af   :  { %v1493_v62 = vpop.f32.mrf.mxu1 }
 0x2b0   :  { %v627_v63 = vpack.c.bf16 %v1493_v62, %v1492_v60 }
 0x2b1   :  { %v608_v0 = vpop.f32.mrf.mxu1 }
 0x2b2   :  { %v626_v1 = vpack.c.bf16 %v608_v0, %v605_v61  ;;  %1494 = vmatprep.subr.bf16.mxu0 %v627_v63 }
 0x2b3   :  { %1495 = vmatpush3.bf16.msra.mxu0 %v627_v63 }
 0x2b4   :  { %1496 = vmatprep.subr.bf16.mxu0 %v626_v1 }
 0x2b7   :  { %1497 = vmatpush3.bf16.msra.mxu0 %v626_v1 }
 0x2b8   :  { %1498 = vmatprep.subr.bf16.mxu0 %v625_v2 }
 0x2bb   :  { %1499 = vmatpush3.bf16.msra.mxu0 %v625_v2 }
 0x2bc   :  { %1500 = vmatprep.subr.bf16.mxu0 %v624_v3 }
 0x2bf   :  { %1501 = vmatpush3.bf16.msra.mxu0 %v624_v3 }
 0x2c0   :  { %1502 = vmatprep.subr.bf16.mxu0 %v623_v5 }
 0x2c3   :  { %1503 = vmatpush3.bf16.msra.mxu0 %v623_v5 }
 0x2c4   :  { %1504 = vmatprep.subr.bf16.mxu0 %v622_v6 }
 0x2c7   :  { %1505 = vmatpush3.bf16.msra.mxu0 %v622_v6 }
 0x2c8   :  { %1506 = vmatprep.subr.bf16.mxu0 %v621_v7 }
 0x2cb   :  { %1507 = vmatpush3.bf16.msra.mxu0 %v621_v7 }
 0x2cc   :  { %1508 = vmatprep.subr.bf16.mxu0 %v620_v8 }
 0x2cf   :  { %1509 = vmatpush3.bf16.msra.mxu0 %v620_v8 }
 0x2d2   :  { %1511 = vmatmul.mubr.bf16.vlgmr.msra.gmra.mxu0 %v1849_v9 }
 0x2d3   :  { %1514 = vmatprep.mubr.bf16.mxu0 %v1854_v10 }
 0x2da   :  { %1515 = vmatmul.mubr.bf16.gmra.mxu0 %v1861_v11 }
 0x2db   :  { %1518 = vmatprep.mubr.bf16.mxu0 %v1866_v12 }
 0x2e2   :  { %1519 = vmatmul.mubr.bf16.gmra.mxu0 %v1873_v13 }
 0x2e3   :  { %1522 = vmatprep.mubr.bf16.mxu0 %v1878_v14 }
 0x2ea   :  { %1523 = vmatmul.mubr.bf16.gmra.mxu0 %v1885_v15 }
 0x2eb   :  { %1562 = vmatprep.mubr.bf16.mxu0 %v1831_v4 }
 0x392   :  { %v1512_v16 = vpop.f32.mrf.mxu0 }
 0x393   :  { %v678_v22 = vadd.f32 %v1512_v16, %v1298_v18 }
 0x394   :  { %v669_v17 = vpop.f32.mrf.mxu0 }
 0x395   :  { %v670_v20 = vadd.f32 %v1298_v18, %v669_v17  ;;  %v734_v29 = vmax.f32 %v678_v22, 0.0 }
 0x396   :  { %v1513_v19 = vpop.f32.mrf.mxu0 }
 0x397   :  { %v681_v21 = vadd.f32 %v1513_v19, %v1298_v18  ;;  %v732_v27 = vmax.f32 %v670_v20, 0.0 }
 0x398   :  { %v672_v23 = vpop.f32.mrf.mxu0 }
 0x399   :  { %v673_v24 = vadd.f32 %v1298_v18, %v672_v23  ;;  %v735_v25 = vmax.f32 %v681_v21, 0.0 }
 0x39a   :  { %v1516_v26 = vpop.f32.mrf.mxu0 }
 0x39b   :  { %v733_v28 = vmax.f32 %v673_v24, 0.0  ;;  %v749_v31 = vpack.c.bf16 %v735_v25, %v734_v29  ;;  %v694_v35 = vadd.f32 %v1516_v26, %v1298_v18 }
 0x39c   :  { %v685_v30 = vpop.f32.mrf.mxu0 }
 0x39d   :  { %v748_v4 = vpack.c.bf16 %v733_v28, %v732_v27  ;;  %v686_v33 = vadd.f32 %v1298_v18, %v685_v30  ;;  %v738_v42 = vmax.f32 %v694_v35, 0.0 }
 0x39e   :  { %v1517_v32 = vpop.f32.mrf.mxu0 }
 0x39f   :  { %v697_v34 = vadd.f32 %v1517_v32, %v1298_v18  ;;  %1530 = vmatprep.mubr.msk.bf16.mxu1 %vm772_vm2, %v748_v4  ;;  %v736_v40 = vmax.f32 %v686_v33, 0.0 }
 0x3a0   :  { %v688_v36 = vpop.f32.mrf.mxu0  ;;  %1531 = vmatmul.mubr.msk.bf16.vlgmr.msra.gmra.mxu1 %vm772_vm2, %v749_v31 }
 0x3a1   :  { %v689_v37 = vadd.f32 %v1298_v18, %v688_v36  ;;  %v739_v38 = vmax.f32 %v697_v34, 0.0 }
 0x3a2   :  { %v1520_v39 = vpop.f32.mrf.mxu0 }
 0x3a3   :  { %v737_v41 = vmax.f32 %v689_v37, 0.0  ;;  %v751_v45 = vpack.c.bf16 %v739_v38, %v738_v42  ;;  %v710_v49 = vadd.f32 %v1520_v39, %v1298_v18  ;;  %v1737_v39 = vmov 0.0  }
 0x3a4   :  { %v701_v43 = vpop.f32.mrf.mxu0  ;;  %1578 = vmatprep.subr.mxu1 %v1737_v39 }
 0x3a5   :  { %v750_v44 = vpack.c.bf16 %v737_v41, %v736_v40  ;;  %v702_v48 = vadd.f32 %v1298_v18, %v701_v43  ;;  %v742_v56 = vmax.f32 %v710_v49, 0.0 }
 0x3a6   :  { %v1521_v46 = vpop.f32.mrf.mxu0 }
 0x3a7   :  { %v713_v47 = vadd.f32 %v1521_v46, %v1298_v18  ;;  %1534 = vmatprep.mubr.msk.bf16.mxu1 %vm772_vm2, %v750_v44  ;;  %v740_v54 = vmax.f32 %v702_v48, 0.0  ;;  %v1309_v48 = vld [vmem:[%s2020_s8] ss:$0 sm:$0xff] }
 0x3a8   :  { %v704_v50 = vpop.f32.mrf.mxu0  ;;  %1535 = vmatmul.mubr.msk.bf16.gmra.mxu1 %vm772_vm2, %v751_v45 }
 0x3a9   :  { %v705_v51 = vadd.f32 %v1298_v18, %v704_v50  ;;  %v743_v52 = vmax.f32 %v713_v47, 0.0 }
 0x3aa   :  { %v1524_v53 = vpop.f32.mrf.mxu0 }
 0x3ab   :  { %v741_v55 = vmax.f32 %v705_v51, 0.0  ;;  %v753_v59 = vpack.c.bf16 %v743_v52, %v742_v56  ;;  %v726_v63 = vadd.f32 %v1524_v53, %v1298_v18 }
 0x3ac   :  { %v717_v57 = vpop.f32.mrf.mxu0 }
 0x3ad   :  { %v752_v58 = vpack.c.bf16 %v741_v55, %v740_v54  ;;  %v718_v61 = vadd.f32 %v1298_v18, %v717_v57  ;;  %v746_v6 = vmax.f32 %v726_v63, 0.0 }
 0x3ae   :  { %v1525_v60 = vpop.f32.mrf.mxu0 }
 0x3af   :  { %v729_v62 = vadd.f32 %v1525_v60, %v1298_v18  ;;  %1538 = vmatprep.mubr.msk.bf16.mxu1 %vm772_vm2, %v752_v58  ;;  %v744_v3 = vmax.f32 %v718_v61, 0.0 }
 0x3b0   :  { %v720_v0 = vpop.f32.mrf.mxu0  ;;  %1539 = vmatmul.mubr.msk.bf16.gmra.mxu1 %vm772_vm2, %v753_v59 }
 0x3b1   :  { %v721_v1 = vadd.f32 %v1298_v18, %v720_v0  ;;  %v747_v2 = vmax.f32 %v729_v62, 0.0 }
 0x3b3   :  { %v745_v5 = vmax.f32 %v721_v1, 0.0  ;;  %v755_v8 = vpack.c.bf16 %v747_v2, %v746_v6 }
 0x3b5   :  { %v754_v7 = vpack.c.bf16 %v745_v5, %v744_v3 }
 0x3b7   :  { %1542 = vmatprep.mubr.msk.bf16.mxu1 %vm772_vm2, %v754_v7 }
 0x3b8   :  { %1543 = vmatmul.mubr.msk.bf16.gmra.mxu1 %vm772_vm2, %v755_v8 }
 0x3b9   :  { %1610 = vmatprep.mubr.msk.f32.mxu1 %vm1738_vm3, %v1737_v39 }
 0x460   :  { %v1532_v16 = vpop.f32.mrf.mxu1 }
 0x462   :  { %v831_v17 = vpop.f32.mrf.mxu1 }
 0x464   :  { %v1533_v19 = vpop.f32.mrf.mxu1 }
 0x465   :  { %v895_v37 = vpack.c.bf16 %v1533_v19, %v1532_v16 }
 0x466   :  { %v834_v20 = vpop.f32.mrf.mxu1 }
 0x467   :  { %v894_v38 = vpack.c.bf16 %v834_v20, %v831_v17 }
 0x468   :  { %v1536_v21 = vpop.f32.mrf.mxu1 }
 0x46a   :  { %v847_v22 = vpop.f32.mrf.mxu1 }
 0x46c   :  { %v1537_v23 = vpop.f32.mrf.mxu1 }
 0x46d   :  { %v897_v35 = vpack.c.bf16 %v1537_v23, %v1536_v21 }
 0x46e   :  { %v850_v24 = vpop.f32.mrf.mxu1 }
 0x46f   :  { %v896_v36 = vpack.c.bf16 %v850_v24, %v847_v22 }
 0x470   :  { %v1540_v25 = vpop.f32.mrf.mxu1 }
 0x472   :  { %v863_v18 = vpop.f32.mrf.mxu1 }
 0x474   :  { %v1541_v26 = vpop.f32.mrf.mxu1 }
 0x475   :  { %v899_v33 = vpack.c.bf16 %v1541_v26, %v1540_v25  ;;  %v1022_v26 = vld [vmem:[#allocation2] sm:$0xff] }
 0x476   :  { %v866_v27 = vpop.f32.mrf.mxu1 }
 0x477   :  { %v898_v34 = vpack.c.bf16 %v866_v27, %v863_v18  ;;  %v1659_v27 = vld [vmem:[%s2021_s9 + $0x8] sm:$0xff]  }
 0x478   :  { %v1544_v28 = vpop.f32.mrf.mxu1 }
 0x47a   :  { %v879_v29 = vpop.f32.mrf.mxu1 }
 0x47c   :  { %v1545_v30 = vpop.f32.mrf.mxu1 }
 0x47d   :  { %v901_v4 = vpack.c.bf16 %v1545_v30, %v1544_v28  ;;  %v1660_v28 = vld [vmem:[%s2021_s9] sm:$0xff]  }
 0x47e   :  { %v882_v31 = vpop.f32.mrf.mxu1 }
 0x47f   :  { %v900_v32 = vpack.c.bf16 %v882_v31, %v879_v29  ;;  %1546 = vmatprep.subr.bf16.mxu0 %v901_v4  ;;  %v1661_v31 = vld [vmem:[%s2023_s11 + $0x8] sm:$0xff]  }
 0x480   :  { %1547 = vmatpush3.bf16.msra.mxu0 %v901_v4 }
 0x481   :  { %1548 = vmatprep.subr.bf16.mxu0 %v900_v32 }
 0x484   :  { %1549 = vmatpush3.bf16.msra.mxu0 %v900_v32  ;;  %v1662_v32 = vld [vmem:[%s2023_s11] sm:$0xff]  }
 0x485   :  { %1550 = vmatprep.subr.bf16.mxu0 %v899_v33 }
 0x488   :  { %1551 = vmatpush3.bf16.msra.mxu0 %v899_v33  ;;  %v1310_v33 = vld [vmem:[%s2022_s10] ss:$0 sm:$0xff]  ;;  %s1739_s10 = smov [#allocation7]  }
 0x489   :  { %1552 = vmatprep.subr.bf16.mxu0 %v898_v34  ;;  %s1250_s11 = sshll.u32 %s1739_s10, 4  ;;  %s1251_s11 = int_to_ptr.vmem [resolvable:$true] %s1250_s11 }
 0x48a   :  { %p1712_p11 = scmp.lt.s32.totalorder %s1251_s11, %s1251_s11 }
 0x48c   :  { %1553 = vmatpush3.bf16.msra.mxu0 %v898_v34 }
 0x48d   :  { %1554 = vmatprep.subr.bf16.mxu0 %v897_v35 }
 0x490   :  { %1555 = vmatpush3.bf16.msra.mxu0 %v897_v35 }
 0x491   :  { %1556 = vmatprep.subr.bf16.mxu0 %v896_v36 }
 0x494   :  { %1557 = vmatpush3.bf16.msra.mxu0 %v896_v36 }
 0x495   :  { %1558 = vmatprep.subr.bf16.mxu0 %v895_v37 }
 0x498   :  { %1559 = vmatpush3.bf16.msra.mxu0 %v895_v37 }
 0x499   :  { %1560 = vmatprep.subr.bf16.mxu0 %v894_v38 }
 0x49c   :  { %1561 = vmatpush3.bf16.msra.mxu0 %v894_v38 }
 0x49f   :  { %1563 = vmatmul.mubr.bf16.vlgmr.msra.gmra.mxu0 %v1849_v9 }
 0x4a0   :  { %1566 = vmatprep.mubr.bf16.mxu0 %v1854_v10 }
 0x4a7   :  { %1567 = vmatmul.mubr.bf16.gmra.mxu0 %v1861_v11 }
 0x4a8   :  { %1570 = vmatprep.mubr.bf16.mxu0 %v1866_v12 }
 0x4af   :  { %1571 = vmatmul.mubr.bf16.gmra.mxu0 %v1873_v13 }
 0x4b0   :  { %1574 = vmatprep.mubr.bf16.mxu0 %v1878_v14 }
 0x4b7   :  { %1575 = vmatmul.mubr.bf16.gmra.mxu0 %v1885_v15 }
 0x55f   :  { %v1564_v9 = vpop.f32.mrf.mxu0 }
 0x560   :  { %v952_v19 = vadd.f32 %v1564_v9, %v1309_v48 }
 0x561   :  { %v1955_v40 = vpop.f32.mrf.mxu0 }
 0x562   :  { %v1008_v23 = vmax.f32 %v952_v19, 0.0  ;;  %v944_v24 = vadd.f32 %v1309_v48, %v1955_v40 }
 0x563   :  { %v1565_v10 = vpop.f32.mrf.mxu0 }
 0x564   :  { %v955_v16 = vadd.f32 %v1565_v10, %v1309_v48  ;;  %v1006_v18 = vmax.f32 %v944_v24, 0.0  ;;  %v1228_v10 = vlaneseq }
 0x565   :  { %v1957_v11 = vpop.f32.mrf.mxu0 }
 0x566   :  { %v1009_v21 = vmax.f32 %v955_v16, 0.0  ;;  %v947_v22 = vadd.f32 %v1309_v48, %v1957_v11  ;;  %v1314_v11 = vld [vmem:[%s2024_s12] ss:$0 sm:$0xff]  ;;  %s1707_s12 = scalar_lea.vmem %s1251_s11, 128 }
 0x567   :  { %v1568_v12 = vpop.f32.mrf.mxu0  ;;  %p1708_p10 = scmp.ne.s32.totalorder %s1251_s11, %s1707_s12  ;;  %p1713_p12 = scmp.lt.s32.totalorder %s1707_s12, %s1707_s12 }
 0x568   :  { %v968_v2 = vadd.f32 %v1568_v12, %v1309_v48  ;;  %v1007_v25 = vmax.f32 %v947_v22, 0.0 }
 0x569   :  { %v959_v41 = vpop.f32.mrf.mxu0  ;;  %p1714_p13 = por %p1713_p12, %p1712_p11 }
 0x56a   :  { %v1012_v7 = vmax.f32 %v968_v2, 0.0  ;;  %v960_v8 = vadd.f32 %v1309_v48, %v959_v41 }
 0x56b   :  { %v1569_v13 = vpop.f32.mrf.mxu0  ;;  %p1715_p0 = pnand %p1714_p13, %p1708_p10 }
 0x56c   :  { %v971_v0 = vadd.f32 %v1569_v13, %v1309_v48  ;;  %v1010_v20 = vmax.f32 %v960_v8, 0.0 }
 0x56d   :  { %v962_v42 = vpop.f32.mrf.mxu0 }
 0x56e   :  { %v1013_v5 = vmax.f32 %v971_v0, 0.0  ;;  %v963_v6 = vadd.f32 %v1309_v48, %v962_v42 }
 0x56f   :  { %v1572_v14 = vpop.f32.mrf.mxu0 }
 0x570   :  { %v984_v58 = vadd.f32 %v1572_v14, %v1309_v48  ;;  %v1011_v17 = vmax.f32 %v963_v6, 0.0 }
 0x571   :  { %v975_v43 = vpop.f32.mrf.mxu0 }
 0x572   :  { %v1016_v62 = vmax.f32 %v984_v58, 0.0  ;;  %v976_v63 = vadd.f32 %v1309_v48, %v975_v43 }
 0x573   :  { %v1573_v15 = vpop.f32.mrf.mxu0 }
 0x574   :  { %v987_v56 = vadd.f32 %v1573_v15, %v1309_v48  ;;  %v1014_v3 = vmax.f32 %v976_v63, 0.0 }
 0x575   :  { %v978_v44 = vpop.f32.mrf.mxu0 }
 0x576   :  { %v1017_v60 = vmax.f32 %v987_v56, 0.0  ;;  %v979_v61 = vadd.f32 %v1309_v48, %v978_v44 }
 0x577   :  { %v1576_v45 = vpop.f32.mrf.mxu0 }
 0x578   :  { %v1000_v49 = vadd.f32 %v1576_v45, %v1309_v48  ;;  %v1015_v1 = vmax.f32 %v979_v61, 0.0 }
 0x579   :  { %v991_v46 = vpop.f32.mrf.mxu0 }
 0x57a   :  { %v1020_v54 = vmax.f32 %v1000_v49, 0.0  ;;  %v992_v55 = vadd.f32 %v1309_v48, %v991_v46 }
 0x57b   :  { %v1577_v47 = vpop.f32.mrf.mxu0 }
 0x57c   :  { %v1003_v50 = vadd.f32 %v1577_v47, %v1309_v48  ;;  %v1018_v59 = vmax.f32 %v992_v55, 0.0 }
 0x57d   :  { %v994_v51 = vpop.f32.mrf.mxu0 }
 0x57e   :  { %v1021_v52 = vmax.f32 %v1003_v50, 0.0  ;;  %v995_v53 = vadd.f32 %v1309_v48, %v994_v51 }
 0x580   :  { %1579 = vmatpush3.msra.mxu1 %v1021_v52  ;;  %v1019_v57 = vmax.f32 %v995_v53, 0.0 }
 0x581   :  { %1580 = vmatprep.subr.mxu1 %v1737_v39 }
 0x582   :  { %1581 = vmatpush3.msra.mxu1 %v1020_v54 }
 0x583   :  { %1582 = vmatprep.subr.mxu1 %v1737_v39 }
 0x584   :  { %1583 = vmatpush3.msra.mxu1 %v1019_v57 }
 0x585   :  { %1584 = vmatprep.subr.mxu1 %v1737_v39 }
 0x586   :  { %1585 = vmatpush3.msra.mxu1 %v1018_v59 }
 0x587   :  { %1586 = vmatprep.subr.mxu1 %v1737_v39 }
 0x588   :  { %1587 = vmatpush3.msra.mxu1 %v1017_v60 }
 0x589   :  { %1588 = vmatprep.subr.mxu1 %v1737_v39 }
 0x58a   :  { %1589 = vmatpush3.msra.mxu1 %v1016_v62 }
 0x58b   :  { %1590 = vmatprep.subr.mxu1 %v1737_v39 }
 0x58c   :  { %1591 = vmatpush3.msra.mxu1 %v1015_v1 }
 0x58d   :  { %1592 = vmatprep.subr.mxu1 %v1737_v39 }
 0x58e   :  { %1593 = vmatpush3.msra.mxu1 %v1014_v3 }
 0x58f   :  { %1594 = vmatprep.subr.mxu1 %v1737_v39 }
 0x590   :  { %1595 = vmatpush3.msra.mxu1 %v1013_v5 }
 0x591   :  { %1596 = vmatprep.subr.mxu1 %v1737_v39 }
 0x592   :  { %1597 = vmatpush3.msra.mxu1 %v1012_v7 }
 0x593   :  { %1598 = vmatprep.subr.mxu1 %v1737_v39 }
 0x594   :  { %1599 = vmatpush3.msra.mxu1 %v1011_v17 }
 0x595   :  { %1600 = vmatprep.subr.mxu1 %v1737_v39 }
 0x596   :  { %1601 = vmatpush3.msra.mxu1 %v1010_v20 }
 0x597   :  { %1602 = vmatprep.subr.mxu1 %v1737_v39 }
 0x598   :  { %1603 = vmatpush3.msra.mxu1 %v1009_v21 }
 0x599   :  { %1604 = vmatprep.subr.mxu1 %v1737_v39 }
 0x59a   :  { %1605 = vmatpush3.msra.mxu1 %v1008_v23 }
 0x59b   :  { %1606 = vmatprep.subr.mxu1 %v1737_v39 }
 0x59c   :  { %1607 = vmatpush3.msra.mxu1 %v1007_v25 }
 0x59d   :  { %1608 = vmatprep.subr.mxu1 %v1737_v39 }
 0x59e   :  { %1609 = vmatpush3.msra.mxu1 %v1006_v18 }
 0x59f   :  { %1611 = vmatmul.mubr.f32.vlgmr.msra.gmra.mxu1 %v1022_v26  ;;  %1613 = vmatprep.subr.bf16.mxu1 %v1737_v39 }
 0x5a0   :  { %1614 = vmatpush3.bf16.msra.mxu1 %v1659_v27  ;;  %1617 = vmatprep.mubr.msk.bf16.mxu1 %vm1738_vm3, %v1737_v39 }
 0x5a1   :  { %1615 = vmatprep.subr.bf16.mxu1 %v1737_v39 }
 0x5a4   :  { %1616 = vmatpush3.bf16.msra.mxu1 %v1660_v28 }
 0x5a5   :  { %1621 = vmatprep.subr.bf16.mxu1 %v1737_v39 }
 0x65f   :  { %v1089_v29 = vpop.f32.mrf.mxu1 }
 0x660   :  { %v1093_v30 = vpack.c.bf16 %v1089_v29, %v1089_v29 }
 0x661   :  { %v1612_v4 = vpop.f32.mrf.mxu1 }
 0x662   :  { %1618 = vmatmul.mubr.msk.bf16.vlgmr.msra.gmra.mxu1 %vm772_vm2, %v1093_v30 }
 0x663   :  { %1625 = vmatprep.mubr.msk.bf16.mxu1 %vm1738_vm3, %v1737_v39  ;;  %1622 = vmatpush3.bf16.msra.mxu1 %v1661_v31 }
 0x664   :  { %1623 = vmatprep.subr.bf16.mxu1 %v1737_v39  ;;  %v1229_v39 = vand.u32 127, %v1228_v10 }
 0x666   :  { %vm1230_vm4 = vcmp.lt.s32.totalorder %v1229_v39, 4 }
 0x667   :  { %1624 = vmatpush3.bf16.msra.mxu1 %v1662_v32 }
 0x722   :  { %v1154_v34 = vpop.f32.mrf.mxu1 }
 0x723   :  { %v1155_v35 = vadd.f32 %v1310_v33, %v1154_v34 }
 0x724   :  { %v1619_v36 = vpop.f32.mrf.mxu1 }
 0x725   :  { %v1160_v37 = vmax.f32 %v1155_v35, 0.0 }
 0x726   :  { %v1157_v38 = vpop.f32.mrf.mxu1 }
 0x727   :  { %v1161_v9 = vpack.c.bf16 %v1160_v37, %v1160_v37 }
 0x728   :  { %v1620_v40 = vpop.f32.mrf.mxu1 }
 0x729   :  { %1626 = vmatmul.mubr.msk.bf16.vlgmr.msra.gmra.mxu1 %vm772_vm2, %v1161_v9 }
 0x7e9   :  { %v1222_v12 = vpop.f32.mrf.mxu1 }
 0x7ea   :  { %v1223_v41 = vadd.f32 %v1314_v11, %v1222_v12 }
 0x7eb   :  { %v1627_v13 = vpop.f32.mrf.mxu1 }
 0x7ec   :  { %v1231_v42 = vsel %vm1230_vm4, %v1223_v41, -1e+30 }
 0x7ed   :  { %1232 = vmax.xlane.f32.xlu0 %v1231_v42  ;;  %v1225_v14 = vpop.f32.mrf.mxu1 }
 0x7ef   :  { %v1628_v43 = vpop.f32.mrf.mxu1 }
 0x876   :  { %v1233_v15 = vpop.xlane.xlu0 %1232 }
 0x877   :  { %v1234_v44 = vsub.f32 %v1231_v42, %v1233_v15 }
 0x879   :  { %v1235_v45 = vmul.f32 1.442695, %v1234_v44 }
 0x87b   :  { %1663 = vpow2.f32 %v1235_v45 }
 0x888   :  { %v1664_v46 = vpop.eup %1663 }
 0x889   :  { %1237 = vadd.xlane.f32.xlu0 %v1664_v46 }
 0x912   :  { %v1238_v48 = vpop.xlane.xlu0 %1237 }
 0x913   :  { %1665 = vlog2.f32 %v1238_v48 }
 0x920   :  { %v1666_v47 = vpop.eup %1665 }
 0x921   :  { %v1240_v49 = vmul.f32 0.6931472, %v1666_v47 }
 0x923   :  { %v1241_v50 = vsub.f32 %v1234_v44, %v1240_v49 }
 0x925   :  { %v1242_v51 = vsel %vm1230_vm4, %v1241_v50, 0.0 }
 0x926   :  { %1243 = vst [vmem:[#allocation7] sm:$0xff] %v1242_v51 }
 0x927   :  { %1718 = shalt.err (!%p1715_p0)
}
 0x928   :  { %1253 = dma.vmem_to_hbm [thread:$0]  %s1251_s11, 128, %s2025_s13, [#allocation4]  }
 0x929   :  { %1731 = dma.done.wait [#allocation4], 128  }
 0x92a   :  { %1732 = vsyncadd [#allocation4], 4294967168 }
 0x92b   :  { %1257 = vsyncpa [#allocation3], 1 }
 0x92c   :  { %1258 = vsyncpa [#allocation6], 1 }
 0x92d   :  { %1259 = vsyncpa [#allocation4], 1 }

</bundles_post_ra>
